<compile_context>
chip_gen: v6e
topology: v6e:2x2x1
jax: 0.10.0
libtpu: 0.0.40
codegen_flags: <defaults>
</compile_context>

<pallas_src>
import functools

import numpy as np
import jax
import jax.numpy as jnp
from jax import lax
from jax.experimental import pallas as pl
from jax.experimental.pallas import tpu as pltpu


# ----------------------------------------------------------------------------- activations
def _apply_act(name, x):
    if name == "relu":
        return jnp.maximum(x, 0.0)
    if name == "sigmoid":
        return 1.0 / (1.0 + jnp.exp(-x))
    if name == "tanh":
        return jnp.tanh(x)
    if name == "leaky_relu":
        return jnp.where(x >= 0, x, 0.01 * x)
    if name == "elu":
        # exp only ever sees <= 0 (no wasted / overflowing EUP work on the positive branch)
        return jnp.where(x >= 0, x, jnp.exp(jnp.minimum(x, 0.0)) - 1.0)
    if name == "silu":
        return x * (1.0 / (1.0 + jnp.exp(-x)))
    raise ValueError(f"unknown activation {name}")


# ------------------------------------------------------------------- fused CNN+MLP kernel
def _fused_cnn_mlp_kernel(*refs, conv_meta, conv_acts, mlp_acts, n_mlp, B_t, L_f):
    # refs = [x_ref, (conv_w, conv_b, conv_S) * n_conv, (mlp_w, mlp_b) * n_mlp, out_ref]
    x_ref = refs[0]
    o_ref = refs[-1]
    params = refs[1:-1]
    n_conv = len(conv_meta)

    # Input slab: (C_in0, B_t * L_pd0), zero padding and batch fold done in the wrapper.
    h = x_ref[...][0].astype(jnp.float32)

    p = 0
    for li in range(n_conv):
        K, s, pk, ps, pool_type = conv_meta[li]
        w = params[p][...]          # (C_out, K*C_in)
        b = params[p + 1][...]      # (C_out, 1)
        S = params[p + 2][...]      # (Wp, n_cols_next) 0/1 compaction + re-padding matrix
        p += 3

        # --- im2col over the full padded slab (over-compute into garbage columns).
        Wt = h.shape[1] - (K - 1)
        slab = jnp.concatenate([h[:, k:k + Wt] for k in range(K)], axis=0)   # (K*C_in, Wt)
        y = jnp.dot(w, slab, preferred_element_type=jnp.float32) + b        # (C_out, Wt)
        y = _apply_act(conv_acts[li], y)

        # --- pooling: pk contiguous slices + elementwise reduce (pure VPU work).
        Wp = Wt - (pk - 1) * s
        m = y[:, 0:Wp]
        for k in range(1, pk):
            tap = y[:, k * s:k * s + Wp]
            m = jnp.maximum(m, tap) if pool_type == "max" else m + tap
        if pool_type == "avg":
            m = m * (1.0 / pk)

        # --- one tiny MXU matmul: select strided pooled columns, drop garbage columns,
        #     and insert the next layer's zero padding (all baked into S).
        h = jnp.dot(m, S, preferred_element_type=jnp.float32)

    # h: (C_f, L_f*B_t), columns in (position-major, batch-minor) order, so the torch
    # Flatten permutation is folded into the pre-permuted first MLP weight.
    G = jnp.concatenate([h[:, l * B_t:(l + 1) * B_t] for l in range(L_f)], axis=0)  # (L_f*C_f, B_t)

    # MLP in transposed layout (features on sublanes, batch on lanes).
    z = G
    for li in range(n_mlp):
        w = params[p][...]          # (F_out, F_in)  -- PyTorch layout used directly
        bb = params[p + 1][...]     # (F_out, 1)
        p += 2
        z = jnp.dot(w, z, preferred_element_type=jnp.float32) + bb
        z = _apply_act(mlp_acts[li], z)

    o_ref[...] = z[None, :, :].astype(o_ref.dtype)   # (1, out_dim, B_t)


# --------------------------------------------------------------- static param preparation
def prepare_params(cfg, conv_params, mlp_params, batch_tile):
    """Hoist all static preprocessing (weight relayouts, compaction matrices) out of
    the forward path.  batch_tile = samples handled per grid step."""
    conv_w, conv_b, conv_S, conv_meta = [], [], [], []
    n_conv = len(conv_params)
    c_in = cfg["input_channels"]
    pad0 = cfg["hidden_conv_padding"][0]
    L_pd = cfg["input_dim"] + 2 * pad0            # padded input length of current layer

    for i, (w, b) in enumerate(conv_params):
        K = cfg["hidden_conv_kernelsize"][i]
        s = cfg["hidden_conv_stride"][i]
        c_out = w.shape[0]
        L_out = (L_pd - K) // s + 1
        pk = cfg["hidden_conv_pool_kernelsize"][i]
        ps = cfg["hidden_conv_pool_stride"][i]
        pool_type = cfg["hidden_conv_pooltype"][i]
        assert pool_type in ("max", "avg")
        L_pool = (L_out - pk) // ps + 1

        # (Cout, Cin, K) -> (Cout, K, Cin) -> (Cout, K*Cin): column index = k*Cin + c
        conv_w.append(jnp.transpose(w, (0, 2, 1)).reshape(c_out, K * c_in))
        conv_b.append(b[:, None])

        # Compaction matrix: picks pooled columns out of the over-computed slab and
        # lays out the next layer's padded input (or the flatten-friendly layout).
        Wt = batch_tile * L_pd - (K - 1)
        Wp = Wt - (pk - 1) * s
        if i < n_conv - 1:
            pad_next = cfg["hidden_conv_padding"][i + 1]
            L_pd_next = L_pool + 2 * pad_next
            n_cols = batch_tile * L_pd_next
            col_of = lambda bi, j: bi * L_pd_next + pad_next + j
        else:
            L_pd_next = None
            n_cols = L_pool * batch_tile
            col_of = lambda bi, j: j * batch_tile + bi       # position-major, batch-minor
        S = np.zeros((Wp, n_cols), np.float32)
        for bi in range(batch_tile):
            for j in range(L_pool):
                S[bi * L_pd + j * ps * s, col_of(bi, j)] = 1.0
        conv_S.append(jnp.asarray(S))
        conv_meta.append((K, s, pk, ps, pool_type))

        c_in = c_out
        if i < n_conv - 1:
            L_pd = L_pd_next
        L_last = L_pool

    L_f, C_f = L_last, c_in

    # Fold the Flatten permutation into the first MLP weight; keep the rest in PyTorch
    # (out, in) layout (the MLP runs transposed: z = W @ z + b).
    W1, _ = mlp_params[0]
    assert W1.shape[1] == C_f * L_f, \
        "module requires hidden_conv_dim[-1] * final_seq_len == first Linear in_features"
    W1g = W1.reshape(W1.shape[0], C_f, L_f).transpose(0, 2, 1).reshape(W1.shape[0], L_f * C_f)
    mlp_w = [W1g] + [W for W, _ in mlp_params[1:]]
    mlp_b = [bb[:, None] for _, bb in mlp_params]

    return dict(conv_w=conv_w, conv_b=conv_b, conv_S=conv_S, conv_meta=tuple(conv_meta),
                mlp_w=mlp_w, mlp_b=mlp_b, L_f=L_f, C_f=C_f,
                pad0=pad0, L_pd0=cfg["input_dim"] + 2 * pad0,
                c_in0=cfg["input_channels"], batch_tile=batch_tile)


# -------------------------------------------------------------------------- fused forward
def cnn1d_mlp_pallas(x, prep, conv_acts, mlp_acts, out_dim):
    B = x.shape[0]
    B_t = prep["batch_tile"]
    assert B % B_t == 0, "batch must be a multiple of the batch tile"
    n_tiles = B // B_t
    pad0, L_pd0, c_in0 = prep["pad0"], prep["L_pd0"], prep["c_in0"]

    # Wrapper-side layout plumbing (free XLA ops): zero-pad the length axis and fold
    # the batch tile into the lane axis, so the kernel's first op is the conv matmul.
    xp = jnp.pad(x.astype(jnp.float32), ((0, 0), (0, 0), (pad0, pad0)))
    x_slab = (xp.reshape(n_tiles, B_t, c_in0, L_pd0)
                .transpose(0, 2, 1, 3)
                .reshape(n_tiles, c_in0, B_t * L_pd0))

    args = [x_slab]
    for w, b, S in zip(prep["conv_w"], prep["conv_b"], prep["conv_S"]):
        args += [w, b, S]
    for w, b in zip(prep["mlp_w"], prep["mlp_b"]):
        args += [w, b]

    in_specs = [pl.BlockSpec((1, c_in0, B_t * L_pd0), lambda i: (i, 0, 0))]
    in_specs += [pl.BlockSpec(a.shape, lambda i, nd=a.ndim: (0,) * nd) for a in args[1:]]

    kern = functools.partial(
        _fused_cnn_mlp_kernel,
        conv_meta=prep["conv_meta"],
        conv_acts=tuple(conv_acts),
        mlp_acts=tuple(mlp_acts),
        n_mlp=len(prep["mlp_w"]),
        B_t=B_t,
        L_f=prep["L_f"])

    res = pl.pallas_call(
        kern,
        out_shape=jax.ShapeDtypeStruct((n_tiles, out_dim, B_t), jnp.float32),
        grid=(n_tiles,),
        in_specs=in_specs,
        out_specs=pl.BlockSpec((1, out_dim, B_t), lambda i: (i, 0, 0)),
        compiler_params=pltpu.CompilerParams(dimension_semantics=("parallel",)),
    )(*args)

    # (n_tiles, out_dim, B_t) -> (B, out_dim)
    return res.transpose(0, 2, 1).reshape(B, out_dim)


# -------------------------------------------------------------------------- pure-JAX reference
def cnn1d_mlp_reference(x, cfg, conv_params, mlp_params):
    y = x
    for i, (w, b) in enumerate(conv_params):
        p = cfg["hidden_conv_padding"][i]
        s = cfg["hidden_conv_stride"][i]
        y = lax.conv_general_dilated(y, w, window_strides=(s,), padding=[(p, p)],
                                     dimension_numbers=("NCH", "OIH", "NCH"))
        y = _apply_act(cfg["conv_acts"][i], y + b[None, :, None])
        pk = cfg["hidden_conv_pool_kernelsize"][i]
        ps = cfg["hidden_conv_pool_stride"][i]
        lp = (y.shape[-1] - pk) // ps + 1
        windows = jnp.stack(
            [y[:, :, k:k + ps * (lp - 1) + 1:ps] for k in range(pk)], axis=-1)
        if cfg["hidden_conv_pooltype"][i] == "max":
            y = jnp.max(windows, axis=-1)
        else:
            y = jnp.mean(windows, axis=-1)
    h = y.reshape(y.shape[0], -1)
    for i, (W, b) in enumerate(mlp_params):
        h = _apply_act(cfg["mlp_acts"][i], h @ W.T + b[None, :])
    return h


# --------------------------------------------------------------------------------------- main
if __name__ == "__main__":
    # Config mirroring cfg_CNNMLP (hidden_conv_dim[-1] == input_dim, required by the module).
    cfg = dict(
        input_dim=16,
        output_dim=5,
        input_channels=4,
        hidden_conv_dim=[8, 16],
        hidden_conv_kernelsize=[3, 3],
        hidden_conv_stride=[1, 1],
        hidden_conv_padding=[1, 1],
        hidden_conv_pooltype=["max", "max"],
        hidden_conv_pool_kernelsize=[2, 2],
        hidden_conv_pool_stride=[2, 2],
        hidden_linear_dim=[32, 32],
        # linear_activation_list = ['Linear_ReLU', 'Linear_Sigmoid']; the module reuses it
        # for conv layers, and the MLP applies acts[0], acts[1], acts[-1]:
        conv_acts=["relu", "sigmoid"],
        mlp_acts=["relu", "sigmoid", "sigmoid"],
    )

    key = jax.random.PRNGKey(0)

    # Conv parameters (PyTorch Conv1d shapes: W (Cout, Cin, K), b (Cout,)).
    conv_params = []
    c_in = cfg["input_channels"]
    for i, c_out in enumerate(cfg["hidden_conv_dim"]):
        K = cfg["hidden_conv_kernelsize"][i]
        key, kw, kb = jax.random.split(key, 3)
        bound = 1.0 / float(c_in * K) ** 0.5
        w = jax.random.uniform(kw, (c_out, c_in, K), jnp.float32, -bound, bound)
        b = jax.random.uniform(kb, (c_out,), jnp.float32, -bound, bound)
        conv_params.append((w, b))
        c_in = c_out

    # Sequence-length bookkeeping (matches the module's arithmetic).
    L = cfg["input_dim"]
    for i in range(len(cfg["hidden_conv_dim"])):
        L = (L + 2 * cfg["hidden_conv_padding"][i] - cfg["hidden_conv_kernelsize"][i]) \
            // cfg["hidden_conv_stride"][i] + 1
        L = (L - cfg["hidden_conv_pool_kernelsize"][i]) \
            // cfg["hidden_conv_pool_stride"][i] + 1
    post_cnn_sequence_length = cfg["input_dim"] * L          # == hidden_conv_dim[-1] * L here

    # MLP parameters (PyTorch Linear shapes: W (out, in), b (out,)).
    mlp_params = []
    dims = [post_cnn_sequence_length] + cfg["hidden_linear_dim"] + [cfg["output_dim"]]
    for i in range(len(dims) - 1):
        fan_in, fan_out = dims[i], dims[i + 1]
        key, kw, kb = jax.random.split(key, 3)
        bound = 1.0 / float(fan_in) ** 0.5
        W = jax.random.uniform(kw, (fan_out, fan_in), jnp.float32, -bound, bound)
        b = jax.random.uniform(kb, (fan_out,), jnp.float32, -bound, bound)
        mlp_params.append((W, b))

    # One-time static preprocessing.  batch_tile=1 -> grid=(B,) marked "parallel"
    # (scale B / batch_tile to fill the 128/256-lane datapath and both v7x cores).
    batch_tile = 1
    prep = prepare_params(cfg, conv_params, mlp_params, batch_tile)

    # Input: (batch, channels, length) = (2, 4, 16).
    key, kx = jax.random.split(key)
    x = jax.random.normal(kx, (2, cfg["input_channels"], cfg["input_dim"]), jnp.float32)

    out = cnn1d_mlp_pallas(x, prep, cfg["conv_acts"], cfg["mlp_acts"], cfg["output_dim"])
    out = jax.block_until_ready(out)

    ref = cnn1d_mlp_reference(x, cfg, conv_params, mlp_params)
    if not bool(jnp.allclose(out, ref, atol=1e-5, rtol=1e-5)):
        raise AssertionError(f"Pallas output mismatch vs reference:\n{out}\n{ref}")

    print("KERNEL_OK")
</pallas_src>

<mosaic_0001>
module attributes {stable_mosaic.version = 11 : i64} {
  func.func @_fused_cnn_mlp_kernel(%arg0: i32, %arg1: memref<1x4x18xf32, #tpu.memory_space<vmem>>, %arg2: memref<8x12xf32, #tpu.memory_space<vmem>>, %arg3: memref<8x1xf32, #tpu.memory_space<vmem>>, %arg4: memref<15x10xf32, #tpu.memory_space<vmem>>, %arg5: memref<16x24xf32, #tpu.memory_space<vmem>>, %arg6: memref<16x1xf32, #tpu.memory_space<vmem>>, %arg7: memref<7x4xf32, #tpu.memory_space<vmem>>, %arg8: memref<32x64xf32, #tpu.memory_space<vmem>>, %arg9: memref<32x1xf32, #tpu.memory_space<vmem>>, %arg10: memref<32x32xf32, #tpu.memory_space<vmem>>, %arg11: memref<32x1xf32, #tpu.memory_space<vmem>>, %arg12: memref<5x32xf32, #tpu.memory_space<vmem>>, %arg13: memref<5x1xf32, #tpu.memory_space<vmem>>, %arg14: memref<1x5x1xf32, #tpu.memory_space<vmem>>) attributes {dimension_semantics = [#tpu.dimension_semantics<parallel>], iteration_bounds = array<i64: 2>, scalar_prefetch = 0 : i64, scratch_operands = 0 : i64, tpu.core_type = #tpu.core_type<tc>, window_params = [{transform_indices = @transform_0, window_bounds = array<i64: 1, 4, 18>}, {pipeline_mode = #tpu.pipeline_mode<synchronous>, transform_indices = @transform_1, window_bounds = array<i64: 8, 12>}, {pipeline_mode = #tpu.pipeline_mode<synchronous>, transform_indices = @transform_2, window_bounds = array<i64: 8, 1>}, {pipeline_mode = #tpu.pipeline_mode<synchronous>, transform_indices = @transform_3, window_bounds = array<i64: 15, 10>}, {pipeline_mode = #tpu.pipeline_mode<synchronous>, transform_indices = @transform_4, window_bounds = array<i64: 16, 24>}, {pipeline_mode = #tpu.pipeline_mode<synchronous>, transform_indices = @transform_5, window_bounds = array<i64: 16, 1>}, {pipeline_mode = #tpu.pipeline_mode<synchronous>, transform_indices = @transform_6, window_bounds = array<i64: 7, 4>}, {pipeline_mode = #tpu.pipeline_mode<synchronous>, transform_indices = @transform_7, window_bounds = array<i64: 32, 64>}, {pipeline_mode = #tpu.pipeline_mode<synchronous>, transform_indices = @transform_8, window_bounds = array<i64: 32, 1>}, {pipeline_mode = #tpu.pipeline_mode<synchronous>, transform_indices = @transform_9, window_bounds = array<i64: 32, 32>}, {pipeline_mode = #tpu.pipeline_mode<synchronous>, transform_indices = @transform_10, window_bounds = array<i64: 32, 1>}, {pipeline_mode = #tpu.pipeline_mode<synchronous>, transform_indices = @transform_11, window_bounds = array<i64: 5, 32>}, {pipeline_mode = #tpu.pipeline_mode<synchronous>, transform_indices = @transform_12, window_bounds = array<i64: 5, 1>}, {transform_indices = @transform_13, window_bounds = array<i64: 1, 5, 1>}]} {
    %c0 = arith.constant 0 : index
    %c0_0 = arith.constant 0 : index
    %c0_1 = arith.constant 0 : index
    %0 = vector.load %arg1[%c0, %c0_0, %c0_1] : memref<1x4x18xf32, #tpu.memory_space<vmem>>, vector<1x4x18xf32>
    %1 = vector.shape_cast %0 : vector<1x4x18xf32> to vector<4x18xf32>
    %c0_2 = arith.constant 0 : index
    %c0_3 = arith.constant 0 : index
    %2 = vector.load %arg2[%c0_2, %c0_3] : memref<8x12xf32, #tpu.memory_space<vmem>>, vector<8x12xf32>
    %c0_4 = arith.constant 0 : index
    %c0_5 = arith.constant 0 : index
    %3 = vector.load %arg3[%c0_4, %c0_5] : memref<8x1xf32, #tpu.memory_space<vmem>>, vector<8x1xf32>
    %c0_6 = arith.constant 0 : index
    %c0_7 = arith.constant 0 : index
    %4 = vector.load %arg4[%c0_6, %c0_7] : memref<15x10xf32, #tpu.memory_space<vmem>>, vector<15x10xf32>
    %5 = vector.extract_strided_slice %1 {offsets = [0, 0], sizes = [4, 16], strides = [1, 1]} : vector<4x18xf32> to vector<4x16xf32>
    %6 = vector.extract_strided_slice %1 {offsets = [0, 1], sizes = [4, 16], strides = [1, 1]} : vector<4x18xf32> to vector<4x16xf32>
    %7 = vector.extract_strided_slice %1 {offsets = [0, 2], sizes = [4, 16], strides = [1, 1]} : vector<4x18xf32> to vector<4x16xf32>
    %8 = tpu.concatenate %5, %6, %7 in 0 : vector<4x16xf32>, vector<4x16xf32>, vector<4x16xf32> -> vector<12x16xf32>
    %cst = arith.constant dense<0.000000e+00> : vector<8x16xf32>
    %9 = tpu.matmul %2, %8, %cst {dimension_numbers = #tpu.dot_dimension_numbers<[1], [0], [0], [1], [0, 0, 1, 1], [], []>} : vector<8x12xf32>, vector<12x16xf32>, vector<8x16xf32> -> vector<8x16xf32>
    %10 = vector.broadcast %3 : vector<8x1xf32> to vector<8x16xf32>
    %11 = arith.addf %9, %10 : vector<8x16xf32>
    %cst_8 = arith.constant 0.000000e+00 : f32
    %12 = vector.broadcast %cst_8 : f32 to vector<8x16xf32>
    %13 = arith.maximumf %11, %12 : vector<8x16xf32>
    %14 = vector.extract_strided_slice %13 {offsets = [0, 0], sizes = [8, 15], strides = [1, 1]} : vector<8x16xf32> to vector<8x15xf32>
    %15 = vector.extract_strided_slice %13 {offsets = [0, 1], sizes = [8, 15], strides = [1, 1]} : vector<8x16xf32> to vector<8x15xf32>
    %16 = arith.maximumf %14, %15 : vector<8x15xf32>
    %cst_9 = arith.constant dense<0.000000e+00> : vector<8x10xf32>
    %17 = tpu.matmul %16, %4, %cst_9 {dimension_numbers = #tpu.dot_dimension_numbers<[1], [0], [0], [1], [0, 0, 1, 1], [], []>} : vector<8x15xf32>, vector<15x10xf32>, vector<8x10xf32> -> vector<8x10xf32>
    %c0_10 = arith.constant 0 : index
    %c0_11 = arith.constant 0 : index
    %18 = vector.load %arg5[%c0_10, %c0_11] : memref<16x24xf32, #tpu.memory_space<vmem>>, vector<16x24xf32>
    %c0_12 = arith.constant 0 : index
    %c0_13 = arith.constant 0 : index
    %19 = vector.load %arg6[%c0_12, %c0_13] : memref<16x1xf32, #tpu.memory_space<vmem>>, vector<16x1xf32>
    %c0_14 = arith.constant 0 : index
    %c0_15 = arith.constant 0 : index
    %20 = vector.load %arg7[%c0_14, %c0_15] : memref<7x4xf32, #tpu.memory_space<vmem>>, vector<7x4xf32>
    %21 = vector.extract_strided_slice %17 {offsets = [0, 0], sizes = [8, 8], strides = [1, 1]} : vector<8x10xf32> to vector<8x8xf32>
    %22 = vector.extract_strided_slice %17 {offsets = [0, 1], sizes = [8, 8], strides = [1, 1]} : vector<8x10xf32> to vector<8x8xf32>
    %23 = vector.extract_strided_slice %17 {offsets = [0, 2], sizes = [8, 8], strides = [1, 1]} : vector<8x10xf32> to vector<8x8xf32>
    %24 = tpu.concatenate %21, %22, %23 in 0 : vector<8x8xf32>, vector<8x8xf32>, vector<8x8xf32> -> vector<24x8xf32>
    %cst_16 = arith.constant dense<0.000000e+00> : vector<16x8xf32>
    %25 = tpu.matmul %18, %24, %cst_16 {dimension_numbers = #tpu.dot_dimension_numbers<[1], [0], [0], [1], [0, 0, 1, 1], [], []>} : vector<16x24xf32>, vector<24x8xf32>, vector<16x8xf32> -> vector<16x8xf32>
    %26 = vector.broadcast %19 : vector<16x1xf32> to vector<16x8xf32>
    %27 = arith.addf %25, %26 : vector<16x8xf32>
    %cst_17 = arith.constant 0.000000e+00 : f32
    %28 = vector.broadcast %cst_17 : f32 to vector<16x8xf32>
    %29 = arith.subf %28, %27 : vector<16x8xf32>
    %30 = math.exp %29 : vector<16x8xf32>
    %cst_18 = arith.constant 1.000000e+00 : f32
    %31 = vector.broadcast %cst_18 : f32 to vector<16x8xf32>
    %32 = arith.addf %31, %30 : vector<16x8xf32>
    %cst_19 = arith.constant 1.000000e+00 : f32
    %33 = vector.broadcast %cst_19 : f32 to vector<16x8xf32>
    %34 = arith.divf %33, %32 : vector<16x8xf32>
    %35 = vector.extract_strided_slice %34 {offsets = [0, 0], sizes = [16, 7], strides = [1, 1]} : vector<16x8xf32> to vector<16x7xf32>
    %36 = vector.extract_strided_slice %34 {offsets = [0, 1], sizes = [16, 7], strides = [1, 1]} : vector<16x8xf32> to vector<16x7xf32>
    %37 = arith.maximumf %35, %36 : vector<16x7xf32>
    %cst_20 = arith.constant dense<0.000000e+00> : vector<16x4xf32>
    %38 = tpu.matmul %37, %20, %cst_20 {dimension_numbers = #tpu.dot_dimension_numbers<[1], [0], [0], [1], [0, 0, 1, 1], [], []>} : vector<16x7xf32>, vector<7x4xf32>, vector<16x4xf32> -> vector<16x4xf32>
    %39 = vector.extract_strided_slice %38 {offsets = [0, 0], sizes = [16, 1], strides = [1, 1]} : vector<16x4xf32> to vector<16x1xf32>
    %40 = vector.extract_strided_slice %38 {offsets = [0, 1], sizes = [16, 1], strides = [1, 1]} : vector<16x4xf32> to vector<16x1xf32>
    %41 = vector.extract_strided_slice %38 {offsets = [0, 2], sizes = [16, 1], strides = [1, 1]} : vector<16x4xf32> to vector<16x1xf32>
    %42 = vector.extract_strided_slice %38 {offsets = [0, 3], sizes = [16, 1], strides = [1, 1]} : vector<16x4xf32> to vector<16x1xf32>
    %43 = tpu.concatenate %39, %40, %41, %42 in 0 : vector<16x1xf32>, vector<16x1xf32>, vector<16x1xf32>, vector<16x1xf32> -> vector<64x1xf32>
    %c0_21 = arith.constant 0 : index
    %c0_22 = arith.constant 0 : index
    %44 = vector.load %arg8[%c0_21, %c0_22] : memref<32x64xf32, #tpu.memory_space<vmem>>, vector<32x64xf32>
    %c0_23 = arith.constant 0 : index
    %c0_24 = arith.constant 0 : index
    %45 = vector.load %arg9[%c0_23, %c0_24] : memref<32x1xf32, #tpu.memory_space<vmem>>, vector<32x1xf32>
    %cst_25 = arith.constant dense<0.000000e+00> : vector<32x1xf32>
    %46 = tpu.matmul %44, %43, %cst_25 {dimension_numbers = #tpu.dot_dimension_numbers<[1], [0], [0], [1], [0, 0, 1, 1], [], []>} : vector<32x64xf32>, vector<64x1xf32>, vector<32x1xf32> -> vector<32x1xf32>
    %47 = arith.addf %46, %45 : vector<32x1xf32>
    %cst_26 = arith.constant 0.000000e+00 : f32
    %48 = vector.broadcast %cst_26 : f32 to vector<32x1xf32>
    %49 = arith.maximumf %47, %48 : vector<32x1xf32>
    %c0_27 = arith.constant 0 : index
    %c0_28 = arith.constant 0 : index
    %50 = vector.load %arg10[%c0_27, %c0_28] : memref<32x32xf32, #tpu.memory_space<vmem>>, vector<32x32xf32>
    %c0_29 = arith.constant 0 : index
    %c0_30 = arith.constant 0 : index
    %51 = vector.load %arg11[%c0_29, %c0_30] : memref<32x1xf32, #tpu.memory_space<vmem>>, vector<32x1xf32>
    %cst_31 = arith.constant dense<0.000000e+00> : vector<32x1xf32>
    %52 = tpu.matmul %50, %49, %cst_31 {dimension_numbers = #tpu.dot_dimension_numbers<[1], [0], [0], [1], [0, 0, 1, 1], [], []>} : vector<32x32xf32>, vector<32x1xf32>, vector<32x1xf32> -> vector<32x1xf32>
    %53 = arith.addf %52, %51 : vector<32x1xf32>
    %cst_32 = arith.constant 0.000000e+00 : f32
    %54 = vector.broadcast %cst_32 : f32 to vector<32x1xf32>
    %55 = arith.subf %54, %53 : vector<32x1xf32>
    %56 = math.exp %55 : vector<32x1xf32>
    %cst_33 = arith.constant 1.000000e+00 : f32
    %57 = vector.broadcast %cst_33 : f32 to vector<32x1xf32>
    %58 = arith.addf %57, %56 : vector<32x1xf32>
    %cst_34 = arith.constant 1.000000e+00 : f32
    %59 = vector.broadcast %cst_34 : f32 to vector<32x1xf32>
    %60 = arith.divf %59, %58 : vector<32x1xf32>
    %c0_35 = arith.constant 0 : index
    %c0_36 = arith.constant 0 : index
    %61 = vector.load %arg12[%c0_35, %c0_36] : memref<5x32xf32, #tpu.memory_space<vmem>>, vector<5x32xf32>
    %c0_37 = arith.constant 0 : index
    %c0_38 = arith.constant 0 : index
    %62 = vector.load %arg13[%c0_37, %c0_38] : memref<5x1xf32, #tpu.memory_space<vmem>>, vector<5x1xf32>
    %cst_39 = arith.constant dense<0.000000e+00> : vector<5x1xf32>
    %63 = tpu.matmul %61, %60, %cst_39 {dimension_numbers = #tpu.dot_dimension_numbers<[1], [0], [0], [1], [0, 0, 1, 1], [], []>} : vector<5x32xf32>, vector<32x1xf32>, vector<5x1xf32> -> vector<5x1xf32>
    %64 = arith.addf %63, %62 : vector<5x1xf32>
    %cst_40 = arith.constant 0.000000e+00 : f32
    %65 = vector.broadcast %cst_40 : f32 to vector<5x1xf32>
    %66 = arith.subf %65, %64 : vector<5x1xf32>
    %67 = math.exp %66 : vector<5x1xf32>
    %cst_41 = arith.constant 1.000000e+00 : f32
    %68 = vector.broadcast %cst_41 : f32 to vector<5x1xf32>
    %69 = arith.addf %68, %67 : vector<5x1xf32>
    %cst_42 = arith.constant 1.000000e+00 : f32
    %70 = vector.broadcast %cst_42 : f32 to vector<5x1xf32>
    %71 = arith.divf %70, %69 : vector<5x1xf32>
    %72 = vector.shape_cast %71 : vector<5x1xf32> to vector<1x5x1xf32>
    %c0_43 = arith.constant 0 : index
    %c0_44 = arith.constant 0 : index
    %c0_45 = arith.constant 0 : index
    %73 = vector.load %arg14[%c0_43, %c0_44, %c0_45] : memref<1x5x1xf32, #tpu.memory_space<vmem>>, vector<1x5x1xf32>
    tpu.vector_store %arg14[%c0_43, %c0_44, %c0_45], %72 {strides = array<i32>} : memref<1x5x1xf32, #tpu.memory_space<vmem>>, vector<1x5x1xf32>,
    return
  }
  func.func @transform_0(%arg0: i32) -> (i32, i32, i32) {
    %c0_i32 = arith.constant 0 : i32
    %c0_i32_0 = arith.constant 0 : i32
    %c0_i32_1 = arith.constant 0 : i32
    return %arg0, %c0_i32, %c0_i32_0 : i32, i32, i32
  }
  func.func @transform_1(%arg0: i32) -> (i32, i32) {
    %c0_i32 = arith.constant 0 : i32
    %c0_i32_0 = arith.constant 0 : i32
    %c0_i32_1 = arith.constant 0 : i32
    return %c0_i32, %c0_i32_0 : i32, i32
  }
  func.func @transform_2(%arg0: i32) -> (i32, i32) {
    %c0_i32 = arith.constant 0 : i32
    %c0_i32_0 = arith.constant 0 : i32
    %c0_i32_1 = arith.constant 0 : i32
    return %c0_i32, %c0_i32_0 : i32, i32
  }
  func.func @transform_3(%arg0: i32) -> (i32, i32) {
    %c0_i32 = arith.constant 0 : i32
    %c0_i32_0 = arith.constant 0 : i32
    %c0_i32_1 = arith.constant 0 : i32
    return %c0_i32, %c0_i32_0 : i32, i32
  }
  func.func @transform_4(%arg0: i32) -> (i32, i32) {
    %c0_i32 = arith.constant 0 : i32
    %c0_i32_0 = arith.constant 0 : i32
    %c0_i32_1 = arith.constant 0 : i32
    return %c0_i32, %c0_i32_0 : i32, i32
  }
  func.func @transform_5(%arg0: i32) -> (i32, i32) {
    %c0_i32 = arith.constant 0 : i32
    %c0_i32_0 = arith.constant 0 : i32
    %c0_i32_1 = arith.constant 0 : i32
    return %c0_i32, %c0_i32_0 : i32, i32
  }
  func.func @transform_6(%arg0: i32) -> (i32, i32) {
    %c0_i32 = arith.constant 0 : i32
    %c0_i32_0 = arith.constant 0 : i32
    %c0_i32_1 = arith.constant 0 : i32
    return %c0_i32, %c0_i32_0 : i32, i32
  }
  func.func @transform_7(%arg0: i32) -> (i32, i32) {
    %c0_i32 = arith.constant 0 : i32
    %c0_i32_0 = arith.constant 0 : i32
    %c0_i32_1 = arith.constant 0 : i32
    return %c0_i32, %c0_i32_0 : i32, i32
  }
  func.func @transform_8(%arg0: i32) -> (i32, i32) {
    %c0_i32 = arith.constant 0 : i32
    %c0_i32_0 = arith.constant 0 : i32
    %c0_i32_1 = arith.constant 0 : i32
    return %c0_i32, %c0_i32_0 : i32, i32
  }
  func.func @transform_9(%arg0: i32) -> (i32, i32) {
    %c0_i32 = arith.constant 0 : i32
    %c0_i32_0 = arith.constant 0 : i32
    %c0_i32_1 = arith.constant 0 : i32
    return %c0_i32, %c0_i32_0 : i32, i32
  }
  func.func @transform_10(%arg0: i32) -> (i32, i32) {
    %c0_i32 = arith.constant 0 : i32
    %c0_i32_0 = arith.constant 0 : i32
    %c0_i32_1 = arith.constant 0 : i32
    return %c0_i32, %c0_i32_0 : i32, i32
  }
  func.func @transform_11(%arg0: i32) -> (i32, i32) {
    %c0_i32 = arith.constant 0 : i32
    %c0_i32_0 = arith.constant 0 : i32
    %c0_i32_1 = arith.constant 0 : i32
    return %c0_i32, %c0_i32_0 : i32, i32
  }
  func.func @transform_12(%arg0: i32) -> (i32, i32) {
    %c0_i32 = arith.constant 0 : i32
    %c0_i32_0 = arith.constant 0 : i32
    %c0_i32_1 = arith.constant 0 : i32
    return %c0_i32, %c0_i32_0 : i32, i32
  }
  func.func @transform_13(%arg0: i32) -> (i32, i32, i32) {
    %c0_i32 = arith.constant 0 : i32
    %c0_i32_0 = arith.constant 0 : i32
    %c0_i32_1 = arith.constant 0 : i32
    return %arg0, %c0_i32, %c0_i32_0 : i32, i32, i32
  }
}

</mosaic_0001>

<bundles_post_ra>
// kernel: tpu_custom_call.1
= control target key start
LH: loop header
LB: loop body
LE: loop exit
PB: predicated region body
PF: predicated region fallthrough
CT: control target
= control target key end

     0   :  { %s1491_s25 = smov 0   ;;  %s1632_s0 = inlined_call_operand.vmem [shape: f32[2,4,18], index: 0, kind: input, shape index: {}]   ;;  %s1633_s1 = inlined_call_operand.vmem [shape: f32[8,12], index: 1, kind: input, shape index: {}]   ;;  %s1634_s2 = inlined_call_operand.vmem [shape: f32[8,1], index: 2, kind: input, shape index: {}]   ;;  %s1635_s3 = inlined_call_operand.vmem [shape: f32[15,10], index: 3, kind: input, shape index: {}]   ;;  %s1636_s4 = inlined_call_operand.vmem [shape: f32[16,24], index: 4, kind: input, shape index: {}]   ;;  %s1637_s5 = inlined_call_operand.vmem [shape: f32[16,1], index: 5, kind: input, shape index: {}]   ;;  %s1638_s6 = inlined_call_operand.vmem [shape: f32[7,4], index: 6, kind: input, shape index: {}]   ;;  %s1639_s7 = inlined_call_operand.vmem [shape: f32[32,64], index: 7, kind: input, shape index: {}]   ;;  %s1640_s8 = inlined_call_operand.vmem [shape: f32[32,1], index: 8, kind: input, shape index: {}]   ;;  %s1641_s9 = inlined_call_operand.vmem [shape: f32[32,32], index: 9, kind: input, shape index: {}]   ;;  %s1642_s10 = inlined_call_operand.vmem [shape: f32[32,1], index: 10, kind: input, shape index: {}]   ;;  %s1643_s11 = inlined_call_operand.vmem [shape: f32[5,32], index: 11, kind: input, shape index: {}]   ;;  %s1644_s12 = inlined_call_operand.vmem [shape: f32[5,1], index: 12, kind: input, shape index: {}]   ;;  %s1645_s13 = inlined_call_operand.vmem [shape: f32[2,5,1], index: 13, kind: output, shape index: {}]  }
   0x1 LB: > { %s1222_s26 = sadd.s32 4294967295, %s1413_s25   ;;  %p1226_p0 = scmp.ge.s32.totalorder %s1413_s25, 1  ;;  %s1413_s25 = sphi %s1491_s25, %s23_s25  }
   0x2   : > { %p386_p1 = scmp.lt.s32.totalorder %s1413_s25, 3 }
   0x4   : > { %p387_p2 = pnand %p1226_p0, %p386_p1 }
   0x5   : > { %p428_p3 = scmp.lt.s32.totalorder (!%p387_p2), %s1222_s26, 1  ;;  %s1418_s16 = smov (!%p387_p2), 126  }
   0x6   : > { %390 = sbr.rel (%p387_p2) target bundleno = 2117 (0x845), region = 72  ;;  %s1419_s17 = smov (!%p387_p2), 127  }
   0x7   : > { %s1420_s21 = smov (!%p387_p2), 125  }
   0xb   : > { %v1415_v0 = vmov 0.0   ;;  %vm1416_vm0 = vmmov 0   ;;  %v438_v1 = vld [vmem:[%s1634_s2] sm:$0xff]  ;;  %s1647_s26 = smov (!%p428_p3, %s1222_s26), 1  ;;  %v1417_v2 = vmov 0   ;;  %vm448_vm1 = vcmask 1043456  }
   0xc   : > { %1288 = vmatprep.subr.mxu0 %v1415_v0  ;;  %1292 = vmatprep.mubr.msk.f32.mxu0 %vm1416_vm0, %v1415_v0  ;;  %s1227_s29 = sshll.u32 %s1647_s26, 2  ;;  %v437_v7 = vld [vmem:[%s1633_s1] sm:$0xff]  ;;  %vm455_vm2 = vcmask 97280   ;;  %v440_v9 = vld [vmem:[%s1635_s3 + $0x8] sm:$0x7f]  ;;  %vm541_vm3 = vcmask 1046528  }
   0xd   : > { %1377 = vset.pattern.permute.xlu1 %v1417_v2  ;;  %1295 = vmatprep.subr.mxu1 %v1415_v0  ;;  %s431_s15 = scalar_lea.vmem %s1632_s0, %s1227_s29  ;;  %v439_v10 = vld [vmem:[%s1635_s3] sm:$0xff]  ;;  %vm537_vm4 = vcmask 121856   ;;  %vm637_vm5 = vcmask 195584   ;;  %v618_v21 = vld [vmem:[%s1637_s5 + $0x8] sm:$0xff]  ;;  %vm741_vm6 = vcmask 56320   ;;  %vm854_vm7 = vcmask 523264  }
   0xe   : > { %452 = vperm.xlu1 %1377, %v438_v1   ;;  %1299 = vmatprep.mubr.msk.f32.mxu1 %vm1416_vm0, %v1415_v0  ;;  %v436_v3 = vld [vmem:[%s431_s15] sm:$0xf]  ;;  %v616_v25 = vld [vmem:[%s1636_s4 + $0x8] sm:$0xff]  ;;  %v848_v57 = vld [vmem:[%s1639_s7 + $0x10] sm:$0xff]  ;;  %vm964_vm8 = vcmask 261120   ;;  %s1228_s28 = sshll.u32 %s1647_s26, 3 }
   0xf   : > { %1378 = vset.pattern.permute.xlu0 %v1417_v2  ;;  %v442_v4 = vrot.slane %v436_v3, 4  ;;  %1296 = vmatpush3.msk.msra.mxu1 %vm541_vm3, %v440_v9  ;;  %v615_v18 = vld [vmem:[%s1636_s4] sm:$0xff]  ;;  %v847_v56 = vld [vmem:[%s1639_s7 + $0x8] sm:$0xff]  ;;  %v849_v58 = vld [vmem:[%s1639_s7 + $0x18] sm:$0xff]  ;;  %s435_s14 = scalar_lea.vmem %s1645_s13, %s1228_s28  ;;  %vm1167_vm9 = vcmask 4096  }
  0x10   : > { %446 = vrot.lane.b32.xlu0 %v436_v3, %s1418_s16  ;;  %1297 = vmatprep.subr.mxu1 %v1415_v0  ;;  %v617_v22 = vld [vmem:[%s1637_s5] sm:$0xff]  ;;  %v853_v62 = vld [vmem:[%s1640_s8 + $0x18] sm:$0xff]  ;;  %v851_v63 = vld [vmem:[%s1640_s8 + $0x8] sm:$0xff] }
  0x11   : > { %1298 = vmatpush3.msra.mxu1 %v439_v10  ;;  %v619_v40 = vld [vmem:[%s1638_s6] sm:$0x7f]  ;;  %v852_v2 = vld [vmem:[%s1640_s8 + $0x10] sm:$0xff] }
  0x12   : > { %1311 = vmatprep.subr.msk.mxu1 %vm541_vm3, %v619_v40  ;;  %v846_v49 = vld [vmem:[%s1639_s7] sm:$0xff] }
  0x13   : > { %v956_v59 = vld [vmem:[%s1641_s9] sm:$0xff] }
  0x14   : > { %443 = vrot.lane.b32.xlu0 %v442_v4, %s1419_s17  ;;  %v850_v4 = vld [vmem:[%s1640_s8] sm:$0xff] }
  0x82   : > { %v447_v5 = vpop.permute.xlu0 %446 }
  0x83   : > { %1289 = vmatpush3.msk.msra.mxu0 %vm448_vm1, %v447_v5 }
  0x84   : > { %1290 = vmatprep.subr.mxu0 %v1415_v0 }
  0x86   : > { %v444_v6 = vpop.permute.xlu0 %443 }
  0x87   : > { %v449_v8 = vsel %vm448_vm1, %v436_v3, %v444_v6 }
  0x88   : > { %1291 = vmatpush3.msra.mxu0 %v449_v8 }
  0x89   : > { %1293 = vmatmul.mubr.msk.f32.vlgmr.msra.gmra.mxu0 %vm455_vm2, %v437_v7  ;;  %v453_v11 = vpop.permute.xlu1 %452 }
  0x8a   : > { %1308 = vmatprep.mubr.msk.f32.mxu0 %vm637_vm5, %v615_v18  ;;  %v960_v18 = vld [vmem:[%s1642_s10] sm:$0xff] }
 0x149   : > { %v527_v12 = vpop.f32.mrf.mxu0 }
 0x14a   : > { %v528_v13 = vadd.f32 %v527_v12, %v453_v11 }
 0x14b   : > { %v1294_v14 = vpop.f32.mrf.mxu0 }
 0x14c   : > { %v531_v15 = vmax.f32 %v528_v13, 0.0  ;;  %v957_v13 = vld [vmem:[%s1641_s9 + $0x8] sm:$0xff]  ;;  %v958_v14 = vld [vmem:[%s1641_s9 + $0x10] sm:$0xff] }
 0x14e   : > { %533 = vrot.lane.b32.xlu1 %v531_v15, %s1419_s17 }
 0x1c0   : > { %v534_v16 = vpop.permute.xlu1 %533 }
 0x1c1   : > { %v536_v17 = vmax.f32 %v531_v15, %v534_v16  ;;  %v959_v15 = vld [vmem:[%s1641_s9 + $0x18] sm:$0xff]  ;;  %v961_v16 = vld [vmem:[%s1642_s10 + $0x8] sm:$0xff] }
 0x1c3   : > { %1300 = vmatmul.mubr.msk.f32.vlgmr.msra.gmra.mxu1 %vm537_vm4, %v536_v17 }
 0x1c4   : > { %1312 = vmatpush3.msk.msra.mxu1 %vm541_vm3, %v619_v40 }
 0x283   : > { %v611_v19 = vpop.f32.mrf.mxu1 }
 0x284   : > { %621 = vrot.lane.b32.xlu1 %v611_v19, %s1419_s17  ;;  %624 = vrot.lane.b32.xlu0 %v611_v19, %s1418_s16 }
 0x285   : > { %v1301_v20 = vpop.f32.mrf.mxu1 }
 0x288   : > { %634 = vperm.xlu1 %1377, %v618_v21   ;;  %629 = vperm.xlu0 %1378, %v617_v22   ;;  %v963_v21 = vld [vmem:[%s1642_s10 + $0x18] sm:$0xff] }
 0x2f6   : > { %v625_v23 = vpop.permute.xlu0 %624  ;;  %v622_v24 = vpop.permute.xlu1 %621 }
 0x2f7   : > { %1302 = vmatprep.subr.mxu0 %v625_v23 }
 0x2f8   : > { %1303 = vmatpush3.msra.mxu0 %v625_v23 }
 0x2f9   : > { %1304 = vmatprep.subr.mxu0 %v622_v24 }
 0x2fa   : > { %1305 = vmatpush3.msra.mxu0 %v622_v24 }
 0x2fb   : > { %1306 = vmatprep.subr.mxu0 %v611_v19 }
 0x2fc   : > { %1307 = vmatpush3.msra.mxu0 %v611_v19 }
 0x2fd   : > { %1309 = vmatmul.mubr.msk.f32.vlgmr.msra.gmra.mxu0 %vm637_vm5, %v616_v25  ;;  %v962_v25 = vld [vmem:[%s1642_s10 + $0x10] sm:$0xff] }
 0x2fe   : > { %1346 = vmatprep.mubr.msk.f32.mxu0 %vm964_vm8, %v956_v59 }
 0x303   : > { %v635_v26 = vpop.permute.xlu1 %634  ;;  %v630_v28 = vpop.permute.xlu0 %629 }
 0x3bd   : > { %v1310_v27 = vpop.f32.mrf.mxu0 }
 0x3be   : > { %v716_v29 = vadd.f32 %v1310_v27, %v635_v26 }
 0x3bf   : > { %v710_v30 = vpop.f32.mrf.mxu0 }
 0x3c0   : > { %v720_v31 = vsub.f32 0.0, %v716_v29  ;;  %v711_v32 = vadd.f32 %v710_v30, %v630_v28 }
 0x3c2   : > { %v723_v33 = vmul.f32 1.442695, %v720_v31  ;;  %v719_v34 = vsub.f32 0.0, %v711_v32 }
 0x3c4   : > { %1379 = vpow2.f32 %v723_v33  ;;  %v721_v35 = vmul.f32 1.442695, %v719_v34 }
 0x3c6   : > { %1381 = vpow2.f32 %v721_v35 }
 0x3d1   : > { %v1380_v36 = vpop.eup %1379 }
 0x3d2   : > { %v726_v37 = vadd.f32 1.0, %v1380_v36 }
 0x3d3   : > { %v1382_v38 = vpop.eup %1381 }
 0x3d4   : > { %1383 = vrcp.f32 %v726_v37  ;;  %v725_v39 = vadd.f32 1.0, %v1382_v38 }
 0x3d6   : > { %1385 = vrcp.f32 %v725_v39 }
 0x3e1   : > { %v1384_v41 = vpop.eup %1383 }
 0x3e2   : > { %735 = vrot.lane.b32.xlu0 %v1384_v41, %s1419_s17 }
 0x3e3   : > { %v1386_v42 = vpop.eup %1385 }
 0x3e4   : > { %733 = vrot.lane.b32.xlu1 %v1386_v42, %s1419_s17 }
 0x454   : > { %v736_v43 = vpop.permute.xlu0 %735 }
 0x455   : > { %v740_v46 = vmax.f32 %v1384_v41, %v736_v43 }
 0x456   : > { %v734_v44 = vpop.permute.xlu1 %733 }
 0x457   : > { %v739_v45 = vmax.f32 %v1386_v42, %v734_v44 }
 0x459   : > { %1313 = vmatprep.mubr.msk.f32.mxu1 %vm741_vm6, %v739_v45 }
 0x45a   : > { %1314 = vmatmul.mubr.msk.f32.vlgmr.msra.gmra.mxu1 %vm741_vm6, %v740_v46 }
 0x45b   : > { %1332 = vmatprep.mubr.msk.f32.mxu1 %vm854_vm7, %v846_v49  ;;  %v1087_v49 = vld [vmem:[%s1644_s12] sm:$0x1f] }
 0x51a   : > { %v1315_v47 = vpop.f32.mrf.mxu1 }
 0x51b   : > { %842 = vrot.lane.b32.xlu1 %v1315_v47, %s1420_s21 }
 0x51c   : > { %v817_v48 = vpop.f32.mrf.mxu1 }
 0x51d   : > { %840 = vrot.lane.b32.xlu0 %v817_v48, %s1420_s21 }
 0x51f   : > { %836 = vrot.lane.b32.xlu1 %v1315_v47, %s1418_s16 }
 0x521   : > { %834 = vrot.lane.b32.xlu0 %v817_v48, %s1418_s16 }
 0x523   : > { %830 = vrot.lane.b32.xlu1 %v1315_v47, %s1419_s17 }
 0x525   : > { %828 = vrot.lane.b32.xlu0 %v817_v48, %s1419_s17 }
 0x58d   : > { %v843_v50 = vpop.permute.xlu1 %842 }
 0x58e   : > { %1316 = vmatprep.subr.mxu1 %v843_v50 }
 0x58f   : > { %1317 = vmatpush3.msra.mxu1 %v843_v50  ;;  %v841_v51 = vpop.permute.xlu0 %840 }
 0x590   : > { %1318 = vmatprep.subr.mxu1 %v841_v51 }
 0x591   : > { %v837_v52 = vpop.permute.xlu1 %836  ;;  %1319 = vmatpush3.msra.mxu1 %v841_v51 }
 0x592   : > { %1320 = vmatprep.subr.mxu1 %v837_v52 }
 0x593   : > { %1321 = vmatpush3.msra.mxu1 %v837_v52  ;;  %v835_v53 = vpop.permute.xlu0 %834 }
 0x594   : > { %1322 = vmatprep.subr.mxu1 %v835_v53 }
 0x595   : > { %v831_v54 = vpop.permute.xlu1 %830  ;;  %1323 = vmatpush3.msra.mxu1 %v835_v53 }
 0x596   : > { %1324 = vmatprep.subr.mxu1 %v831_v54 }
 0x597   : > { %1325 = vmatpush3.msra.mxu1 %v831_v54  ;;  %v829_v55 = vpop.permute.xlu0 %828 }
 0x598   : > { %1326 = vmatprep.subr.mxu1 %v829_v55 }
 0x599   : > { %1327 = vmatpush3.msra.mxu1 %v829_v55 }
 0x59a   : > { %1328 = vmatprep.subr.mxu1 %v1315_v47 }
 0x59b   : > { %1329 = vmatpush3.msra.mxu1 %v1315_v47  ;;  %v1086_v47 = vld [vmem:[%s1643_s11] sm:$0x1f] }
 0x59c   : > { %1330 = vmatprep.subr.mxu1 %v817_v48 }
 0x59d   : > { %1331 = vmatpush3.msra.mxu1 %v817_v48 }
 0x59e   : > { %1333 = vmatmul.mubr.msk.f32.vlgmr.msra.gmra.mxu1 %vm854_vm7, %v847_v56 }
 0x59f   : > { %1335 = vmatprep.mubr.msk.f32.mxu1 %vm854_vm7, %v848_v57 }
 0x5a2   : > { %1336 = vmatmul.mubr.msk.f32.gmra.mxu1 %vm854_vm7, %v849_v58 }
 0x65e   : > { %v1334_v60 = vpop.f32.mrf.mxu1 }
 0x65f   : > { %v939_v6 = vadd.f32 %v1334_v60, %v851_v63 }
 0x660   : > { %v933_v61 = vpop.f32.mrf.mxu1 }
 0x661   : > { %v934_v9 = vadd.f32 %v933_v61, %v850_v4  ;;  %v953_v11 = vmax.f32 %v939_v6, 0.0 }
 0x662   : > { %v1337_v1 = vpop.f32.mrf.mxu1 }
 0x663   : > { %v949_v3 = vadd.f32 %v1337_v1, %v853_v62  ;;  %v952_v12 = vmax.f32 %v934_v9, 0.0 }
 0x664   : > { %v943_v5 = vpop.f32.mrf.mxu1 }
 0x665   : > { %v955_v7 = vmax.f32 %v949_v3, 0.0  ;;  %v944_v8 = vadd.f32 %v943_v5, %v852_v2 }
 0x667   : > { %v954_v10 = vmax.f32 %v944_v8, 0.0  ;;  %1338 = vmatprep.subr.mxu0 %v955_v7 }
 0x668   : > { %1339 = vmatpush3.msra.mxu0 %v955_v7 }
 0x669   : > { %1340 = vmatprep.subr.mxu0 %v954_v10 }
 0x66a   : > { %1341 = vmatpush3.msra.mxu0 %v954_v10 }
 0x66b   : > { %1342 = vmatprep.subr.mxu0 %v953_v11 }
 0x66c   : > { %1343 = vmatpush3.msra.mxu0 %v953_v11 }
 0x66d   : > { %1344 = vmatprep.subr.mxu0 %v952_v12 }
 0x66e   : > { %1345 = vmatpush3.msra.mxu0 %v952_v12 }
 0x66f   : > { %1347 = vmatmul.mubr.msk.f32.vlgmr.msra.gmra.mxu0 %vm964_vm8, %v957_v13  ;;  %1352 = vmatprep.subr.mxu0 %v1415_v0 }
 0x670   : > { %1349 = vmatprep.mubr.msk.f32.mxu0 %vm964_vm8, %v958_v14 }
 0x673   : > { %1350 = vmatmul.mubr.msk.f32.gmra.mxu0 %vm964_vm8, %v959_v15 }
 0x674   : > { %1360 = vmatprep.mubr.msk.f32.mxu0 %vm1416_vm0, %v1415_v0 }
 0x72f   : > { %v1348_v17 = vpop.f32.mrf.mxu0 }
 0x730   : > { %v1049_v19 = vadd.f32 %v1348_v17, %v961_v16 }
 0x731   : > { %v1043_v20 = vpop.f32.mrf.mxu0 }
 0x732   : > { %v1063_v22 = vsub.f32 0.0, %v1049_v19  ;;  %v1044_v23 = vadd.f32 %v1043_v20, %v960_v18 }
 0x733   : > { %v1351_v24 = vpop.f32.mrf.mxu0 }
 0x734   : > { %v1062_v26 = vsub.f32 0.0, %v1044_v23  ;;  %v1059_v27 = vadd.f32 %v1351_v24, %v963_v21  ;;  %v1068_v28 = vmul.f32 1.442695, %v1063_v22 }
 0x735   : > { %v1053_v29 = vpop.f32.mrf.mxu0 }
 0x736   : > { %v1065_v30 = vsub.f32 0.0, %v1059_v27  ;;  %v1054_v31 = vadd.f32 %v1053_v29, %v962_v25  ;;  %v1066_v32 = vmul.f32 1.442695, %v1062_v26  ;;  %1387 = vpow2.f32 %v1068_v28 }
 0x738   : > { %v1072_v33 = vmul.f32 1.442695, %v1065_v30  ;;  %v1064_v34 = vsub.f32 0.0, %v1054_v31 }
 0x73a   : > { %1389 = vpow2.f32 %v1072_v33  ;;  %v1070_v35 = vmul.f32 1.442695, %v1064_v34 }
 0x73b   : > { %1391 = vpow2.f32 %v1066_v32 }
 0x73c   : > { %1393 = vpow2.f32 %v1070_v35 }
 0x743   : > { %v1388_v36 = vpop.eup %1387 }
 0x744   : > { %v1075_v41 = vadd.f32 1.0, %v1388_v36 }
 0x747   : > { %v1390_v37 = vpop.eup %1389 }
 0x748   : > { %v1392_v38 = vpop.eup %1391  ;;  %v1077_v39 = vadd.f32 1.0, %v1390_v37 }
 0x749   : > { %v1394_v40 = vpop.eup %1393  ;;  %v1074_v43 = vadd.f32 1.0, %v1392_v38 }
 0x74a   : > { %1395 = vrcp.f32 %v1077_v39  ;;  %v1076_v42 = vadd.f32 1.0, %v1394_v40 }
 0x74c   : > { %1397 = vrcp.f32 %v1076_v42 }
 0x74d   : > { %1399 = vrcp.f32 %v1075_v41 }
 0x74e   : > { %1401 = vrcp.f32 %v1074_v43 }
 0x757   : > { %v1396_v44 = vpop.eup %1395 }
 0x758   : > { %1353 = vmatpush3.msra.mxu0 %v1396_v44 }
 0x759   : > { %v1398_v45 = vpop.eup %1397  ;;  %1354 = vmatprep.subr.mxu0 %v1415_v0 }
 0x75a   : > { %1355 = vmatpush3.msra.mxu0 %v1398_v45  ;;  %v1400_v46 = vpop.eup %1399 }
 0x75b   : > { %1356 = vmatprep.subr.mxu0 %v1415_v0  ;;  %v1402_v48 = vpop.eup %1401 }
 0x75c   : > { %1357 = vmatpush3.msra.mxu0 %v1400_v46 }
 0x75d   : > { %1358 = vmatprep.subr.mxu0 %v1415_v0 }
 0x75e   : > { %1359 = vmatpush3.msra.mxu0 %v1402_v48 }
 0x75f   : > { %1361 = vmatmul.mubr.msk.f32.vlgmr.msra.gmra.mxu0 %vm964_vm8, %v1086_v47 }
 0x81f   : > { %v1157_v50 = vpop.f32.mrf.mxu0 }
 0x820   : > { %v1158_v51 = vadd.f32 %v1157_v50, %v1087_v49 }
 0x821   : > { %v1362_v52 = vpop.f32.mrf.mxu0 }
 0x822   : > { %v1161_v53 = vsub.f32 0.0, %v1158_v51 }
 0x824   : > { %v1162_v54 = vmul.f32 1.442695, %v1161_v53 }
 0x826   : > { %1403 = vpow2.f32 %v1162_v54 }
 0x833   : > { %v1404_v55 = vpop.eup %1403 }
 0x834   : > { %v1164_v56 = vadd.f32 1.0, %v1404_v55 }
 0x836   : > { %1405 = vrcp.f32 %v1164_v56 }
 0x843   : > { %v1406_v0 = vpop.eup %1405 }
 0x844   : > { %1168 = vst.msk [vmem:[%s435_s14] sm:$0x1f] %vm1167_vm9, %v1406_v0 }
 0x845 PF: > { %s23_s25 = sadd.s32 1, %s1413_s25  }
 0x846   : > { %p20_p4 = scmp.ge.s32.totalorder %s23_s25, 4  }
 0x848   :  { %22 = sbr.rel (!%p20_p4) target bundleno = 1 (0x1), region = 102 }

</bundles_post_ra>
